<compile_context>
chip_gen: v7x
topology: tpu7x:2x2x1
jax: 0.10.0
libtpu: 0.0.40
codegen_flags: <defaults>
</compile_context>

<pallas_src>
import functools

import numpy as np
import jax
import jax.numpy as jnp
from jax.experimental import pallas as pl
from jax.experimental.pallas import tpu as pltpu

EPS = 1e-5  # PyTorch BatchNorm2d default eps

_VMEM_SPEC = pl.BlockSpec(memory_space=pltpu.MemorySpace.VMEM)


@functools.lru_cache(maxsize=None)
def _roll_like_jnp() -> bool:
    """Probe pltpu.roll's rotation convention once (defensive: match jnp.roll)."""
    def k(x_ref, o_ref):
        o_ref[...] = pltpu.roll(x_ref[...], 1, 1)

    x = jnp.broadcast_to(jnp.arange(256, dtype=jnp.float32)[None, :], (8, 256))
    y = pl.pallas_call(
        k,
        out_shape=jax.ShapeDtypeStruct((8, 256), jnp.float32),
        in_specs=[_VMEM_SPEC],
        out_specs=_VMEM_SPEC,
    )(x)
    # jnp.roll convention: roll(x, 1)[0, 1] == x[0, 0] == 0.
    return bool(jax.device_get(y)[0, 1] == 0.0)


# --------------------------------------------------------------------------
# Pass 1: ConvTranspose2d (k=(3,4), s=(1,2), p=(1,1)) + Conv1 batch statistics
# --------------------------------------------------------------------------
def _deconv_conv1_kernel(x3_ref, efe_ref, efo_ref, mask_ref,
                         we0_ref, we1_ref, wo1_ref, wo2_ref,
                         w1a_ref, w1b_ref,
                         hpe_ref, hpo_ref, s1sum_ref, s1sq_ref,
                         *, shift1, shift2):
    f32 = jnp.float32

    def mm(w_ref, x):
        return jnp.dot(w_ref[...], x, preferred_element_type=f32)

    x0 = x3_ref[...]                       # [3*CO, L] (3 row-shifted views)
    x1 = pltpu.roll(x0, shift1, 1)         # x1[:, j] == x0[:, j + 1]
    x2 = pltpu.roll(x0, shift2, 1)         # x2[:, j] == x0[:, j + 2]

    # Deconv: 2 fused-K (K = 3*CO) matmuls per output-column parity.
    hp_e = mm(we0_ref, x0) + mm(we1_ref, x1)
    hp_o = mm(wo1_ref, x1) + mm(wo2_ref, x2)

    # Conv1 (1x1) on concat([Highpass, encode_fea]); only its batch statistics
    # are needed in this pass (BatchNorm1 is in training mode).
    s1_e = mm(w1a_ref, hp_e) + mm(w1b_ref, efe_ref[...])
    s1_o = mm(w1a_ref, hp_o) + mm(w1b_ref, efo_ref[...])

    m = mask_ref[...]                      # [1, L]; zero on the 2 pad cols/row
    s1_e = s1_e * m
    s1_o = s1_o * m

    hpe_ref[...] = hp_e
    hpo_ref[...] = hp_o
    s1sum_ref[...] = (jnp.sum(s1_e, axis=1, keepdims=True)
                      + jnp.sum(s1_o, axis=1, keepdims=True))[None]
    s1sq_ref[...] = (jnp.sum(s1_e * s1_e, axis=1, keepdims=True)
                     + jnp.sum(s1_o * s1_o, axis=1, keepdims=True))[None]


# --------------------------------------------------------------------------
# Pass 2: BN1 + PReLU1 + gate + Conv2, accumulating BN2 batch statistics
# --------------------------------------------------------------------------
def _bn1_gate_conv2_kernel(hpe_ref, hpo_ref, efe_ref, efo_ref, mask_ref,
                           w1a_ref, w1b_ref, w2a_ref, w2b_ref,
                           sc1_ref, sh1_ref, a1_ref,
                           s2e_ref, s2o_ref, s2sum_ref, s2sq_ref):
    f32 = jnp.float32

    def mm(w_ref, x):
        return jnp.dot(w_ref[...], x, preferred_element_type=f32)

    sc1 = sc1_ref[...]
    sh1 = sh1_ref[...]
    a1 = a1_ref[...]
    m = mask_ref[...]

    def branch(hp, ef):
        s1 = mm(w1a_ref, hp) + mm(w1b_ref, ef)   # recompute Conv1 (cheaper than storing)
        y1 = s1 * sc1 + sh1                      # BatchNorm1 (global batch stats)
        y1 = jnp.where(y1 >= 0.0, y1, a1 * y1)   # PReLU1
        g = y1 * ef                              # gate with encoder feature
        return (mm(w2a_ref, g) + mm(w2b_ref, hp)) * m   # Conv2, pad cols zeroed

    s2_e = branch(hpe_ref[...], efe_ref[...])
    s2_o = branch(hpo_ref[...], efo_ref[...])

    s2e_ref[...] = s2_e
    s2o_ref[...] = s2_o
    s2sum_ref[...] = (jnp.sum(s2_e, axis=1, keepdims=True)
                      + jnp.sum(s2_o, axis=1, keepdims=True))[None]
    s2sq_ref[...] = (jnp.sum(s2_e * s2_e, axis=1, keepdims=True)
                     + jnp.sum(s2_o * s2_o, axis=1, keepdims=True))[None]


# --------------------------------------------------------------------------
# Pass 3: BN2 + PReLU2 + residual add
# --------------------------------------------------------------------------
def _bn2_residual_kernel(s2e_ref, s2o_ref, hpe_ref, hpo_ref,
                         sc2_ref, sh2_ref, a2_ref,
                         oe_ref, oo_ref):
    sc2 = sc2_ref[...]
    sh2 = sh2_ref[...]
    a2 = a2_ref[...]

    def fin(s2, hp):
        y = s2 * sc2 + sh2                       # BatchNorm2
        y = jnp.where(y >= 0.0, y, a2 * y)       # PReLU2
        return y + hp                            # residual with Highpass_long

    oe_ref[...] = fin(s2e_ref[...], hpe_ref[...])
    oo_ref[...] = fin(s2o_ref[...], hpo_ref[...])


# --------------------------------------------------------------------------
# Wrapper (layout glue, weight reshapes, BN-stat finalisation)
# --------------------------------------------------------------------------
def _pick_row_tile(R, Wp, row_tile=None, target=128):
    def ok(tr):
        return tr > 0 and R % tr == 0 and (tr * Wp) % 128 == 0

    if row_tile is not None and ok(row_tile):
        return row_tile
    for tr in range(min(R, target), 0, -1):
        if ok(tr):
            return tr
    return R  # single full-extent tile (full-dim blocks are always legal)


def gated_block_forward(in_module, encode_fea, params, *, row_tile=None):
    """in_module: [N, CO, H, W] NCHW; encode_fea: [N, CF, H, 2W] NCHW.
    Returns [N, DC, H, 2W] NCHW (training-mode BatchNorm, like the module)."""
    wd, w1, w2 = params["wd"], params["w1"], params["w2"]
    g1, b1, g2, b2 = params["g1"], params["b1"], params["g2"], params["b2"]
    a1, a2 = params["a1"], params["a2"]

    N, CO, H, W = in_module.shape
    CF = encode_fea.shape[1]
    DC = wd.shape[1]
    R = N * H
    Wp = W + 2
    Ltot = R * Wp
    f32 = jnp.float32

    # ---- channel-major layout; pixels (each row padded to W+2 cols) on lanes
    x = in_module.astype(f32)
    xp = jnp.pad(x, ((0, 0), (0, 0), (1, 1), (1, 1)))            # [N,CO,H+2,W+2]
    x3 = jnp.stack([xp[:, :, a:a + H, :] for a in range(3)], 0)  # [3,N,CO,H,Wp]
    x3 = jnp.transpose(x3, (0, 2, 1, 3, 4)).reshape(3 * CO, Ltot)

    ef = encode_fea.astype(f32)

    def to_lanes(t):  # [N, C, H, W] -> [C, R*Wp] with 2 zero cols per row
        t = jnp.pad(t, ((0, 0), (0, 0), (0, 0), (0, 2)))
        return jnp.transpose(t, (1, 0, 2, 3)).reshape(t.shape[1], Ltot)

    efe = to_lanes(ef[:, :, :, 0::2])   # even output columns
    efo = to_lanes(ef[:, :, :, 1::2])   # odd output columns

    mask = jnp.pad(jnp.ones((R, W), f32), ((0, 0), (0, 2))).reshape(1, Ltot)

    # ---- weights: fused deconv taps + 1x1-conv matrices --------------------
    def tap(kw):  # -> [DC, 3*CO], column index = a*CO + c, a = 2 - kh
        w = jnp.flip(wd[:, :, :, kw], axis=2)                    # [CO, DC, 3]
        return jnp.transpose(w, (1, 2, 0)).reshape(DC, 3 * CO).astype(f32)

    we0, we1, wo1, wo2 = tap(3), tap(1), tap(2), tap(0)
    w1m = w1[:, :, 0, 0].astype(f32)
    w1a, w1b = w1m[:, :DC], w1m[:, DC:]
    w2m = w2[:, :, 0, 0].astype(f32)
    w2a, w2b = w2m[:, :DC], w2m[:, DC:]
    a1v = jnp.full((DC, 1), a1, dtype=f32)
    a2v = jnp.full((DC, 1), a2, dtype=f32)

    # ---- grid / tiling ------------------------------------------------------
    TR = _pick_row_tile(R, Wp, row_tile)
    L = TR * Wp
    T = R // TR
    like_jnp = _roll_like_jnp()
    shift1 = (L - 1) if like_jnp else 1     # produce x[:, j+1]
    shift2 = (L - 2) if like_jnp else 2     # produce x[:, j+2]

    cparams = pltpu.CompilerParams(
        dimension_semantics=("parallel",),          # v7x: split tiles over TCs
        vmem_limit_bytes=48 * 1024 * 1024,          # safe on v7x (64 MiB phys)
    )

    def lane_spec(c):
        return pl.BlockSpec((c, L), lambda i: (0, i))

    def const_spec(shape):
        nd = len(shape)
        return pl.BlockSpec(shape, lambda i: (0,) * nd)

    stat_spec = pl.BlockSpec((1, DC, 1), lambda i: (i, 0, 0))
    stat_shape = jax.ShapeDtypeStruct((T, DC, 1), f32)
    act_shape = jax.ShapeDtypeStruct((DC, Ltot), f32)

    # ---- pass 1: Deconv + Conv1 statistics ---------------------------------
    hp_e, hp_o, s1sum, s1sq = pl.pallas_call(
        functools.partial(_deconv_conv1_kernel, shift1=shift1, shift2=shift2),
        grid=(T,),
        in_specs=[lane_spec(3 * CO), lane_spec(CF), lane_spec(CF), lane_spec(1),
                  const_spec((DC, 3 * CO)), const_spec((DC, 3 * CO)),
                  const_spec((DC, 3 * CO)), const_spec((DC, 3 * CO)),
                  const_spec((DC, DC)), const_spec((DC, CF))],
        out_specs=(lane_spec(DC), lane_spec(DC), stat_spec, stat_spec),
        out_shape=(act_shape, act_shape, stat_shape, stat_shape),
        compiler_params=cparams,
    )(x3, efe, efo, mask, we0, we1, wo1, wo2, w1a, w1b)

    count = 2.0 * R * W   # pixels per channel over (N, H, 2W)

    def bn_affine(ssum, ssq, gamma, beta):
        s = jnp.sum(ssum[:, :, 0], axis=0)
        q = jnp.sum(ssq[:, :, 0], axis=0)
        mean = s / count
        var = jnp.maximum(q / count - mean * mean, 0.0)
        scale = gamma.astype(f32) * jax.lax.rsqrt(var + EPS)
        shift = beta.astype(f32) - mean * scale
        return scale.reshape(DC, 1), shift.reshape(DC, 1)

    sc1, sh1 = bn_affine(s1sum, s1sq, g1, b1)

    # ---- pass 2: BN1 + PReLU + gate + Conv2 (+ BN2 statistics) -------------
    s2_e, s2_o, s2sum, s2sq = pl.pallas_call(
        _bn1_gate_conv2_kernel,
        grid=(T,),
        in_specs=[lane_spec(DC), lane_spec(DC), lane_spec(CF), lane_spec(CF),
                  lane_spec(1),
                  const_spec((DC, DC)), const_spec((DC, CF)),
                  const_spec((DC, DC)), const_spec((DC, DC)),
                  const_spec((DC, 1)), const_spec((DC, 1)), const_spec((DC, 1))],
        out_specs=(lane_spec(DC), lane_spec(DC), stat_spec, stat_spec),
        out_shape=(act_shape, act_shape, stat_shape, stat_shape),
        compiler_params=cparams,
    )(hp_e, hp_o, efe, efo, mask, w1a, w1b, w2a, w2b, sc1, sh1, a1v)

    sc2, sh2 = bn_affine(s2sum, s2sq, g2, b2)

    # ---- pass 3: BN2 + PReLU + residual -------------------------------------
    out_e, out_o = pl.pallas_call(
        _bn2_residual_kernel,
        grid=(T,),
        in_specs=[lane_spec(DC), lane_spec(DC), lane_spec(DC), lane_spec(DC),
                  const_spec((DC, 1)), const_spec((DC, 1)), const_spec((DC, 1))],
        out_specs=(lane_spec(DC), lane_spec(DC)),
        out_shape=(act_shape, act_shape),
        compiler_params=cparams,
    )(s2_e, s2_o, hp_e, hp_o, sc2, sh2, a2v)

    # ---- back to NCHW, interleave the even/odd output-column streams -------
    def from_lanes(o):
        return o.reshape(DC, N, H, Wp)[:, :, :, :W]

    out = jnp.stack([from_lanes(out_e), from_lanes(out_o)], axis=-1)
    out = out.reshape(DC, N, H, 2 * W)
    return jnp.transpose(out, (1, 0, 2, 3))          # [N, DC, H, 2W]


# --------------------------------------------------------------------------
# Pure-JAX reference (mirrors the PyTorch module, training-mode BatchNorm)
# --------------------------------------------------------------------------
def gated_block_reference(in_module, encode_fea, params):
    wd, w1, w2 = params["wd"], params["w1"], params["w2"]
    g1, b1, g2, b2 = params["g1"], params["b1"], params["g2"], params["b2"]
    a1, a2 = params["a1"], params["a2"]

    w_t = jnp.flip(wd, axis=(2, 3)).transpose(1, 0, 2, 3)          # [DC, CO, 3, 4]
    hp = jax.lax.conv_general_dilated(
        in_module, w_t, window_strides=(1, 1),
        padding=[(1, 1), (2, 2)], lhs_dilation=(1, 2),
        dimension_numbers=('NCHW', 'OIHW', 'NCHW'))

    def conv1x1(x, w):
        return jnp.einsum('nchw,oc->nohw', x, w[:, :, 0, 0])

    def bn(x, g, b):
        mean = x.mean(axis=(0, 2, 3), keepdims=True)
        var = x.var(axis=(0, 2, 3), keepdims=True)
        return ((x - mean) * jax.lax.rsqrt(var + EPS)
                * g.reshape(1, -1, 1, 1) + b.reshape(1, -1, 1, 1))

    def prelu(x, a):
        return jnp.where(x >= 0, x, a * x)

    s = conv1x1(jnp.concatenate([hp, encode_fea], axis=1), w1)
    s = prelu(bn(s, g1, b1), a1)
    s = s * encode_fea
    s = conv1x1(jnp.concatenate([s, hp], axis=1), w2)
    s = prelu(bn(s, g2, b2), a2)
    return s + hp


# --------------------------------------------------------------------------
if __name__ == "__main__":
    # DC == CF is required by the elementwise gating in the module's forward.
    N, CO, DC, CF, H, W = 2, 16, 8, 8, 16, 14

    key = jax.random.PRNGKey(0)
    ks = jax.random.split(key, 9)
    in_module = jax.random.normal(ks[0], (N, CO, H, W), jnp.float32)
    encode_fea = jax.random.normal(ks[1], (N, CF, H, 2 * W), jnp.float32)

    params = dict(
        wd=jax.random.normal(ks[2], (CO, DC, 3, 4), jnp.float32) * 0.1,      # ConvTranspose2d [in, out, kH, kW]
        w1=jax.random.normal(ks[3], (DC, DC + CF, 1, 1), jnp.float32) * 0.1, # Conv1 [out, in, 1, 1]
        w2=jax.random.normal(ks[4], (DC, 2 * DC, 1, 1), jnp.float32) * 0.1,  # Conv2 [out, in, 1, 1]
        g1=1.0 + 0.1 * jax.random.normal(ks[5], (DC,), jnp.float32),
        b1=0.1 * jax.random.normal(ks[6], (DC,), jnp.float32),
        g2=1.0 + 0.1 * jax.random.normal(ks[7], (DC,), jnp.float32),
        b2=0.1 * jax.random.normal(ks[8], (DC,), jnp.float32),
        a1=0.25,   # PReLU defaults
        a2=0.25,
    )

    # row_tile=8 -> 4 grid tiles per kernel: exercises streaming + the
    # cross-tile BatchNorm statistics reduction.
    out = jax.block_until_ready(
        gated_block_forward(in_module, encode_fea, params, row_tile=8))
    ref = jax.block_until_ready(gated_block_reference(in_module, encode_fea, params))

    assert out.shape == (N, DC, H, 2 * W), out.shape
    # Default (non-HIGHEST) MXU precision => bf16-level matmul rounding;
    # tolerance sized accordingly.
    np.testing.assert_allclose(np.asarray(out), np.asarray(ref),
                               rtol=3e-2, atol=3e-2)
    print("KERNEL_OK")
</pallas_src>

<mosaic_0001>
module attributes {stable_mosaic.version = 11 : i64} {
  func.func @k(%arg0: memref<8x256xf32, #tpu.memory_space<vmem>>, %arg1: memref<8x256xf32, #tpu.memory_space<vmem>>) attributes {dimension_semantics = [], scalar_prefetch = 0 : i64, scratch_operands = 0 : i64, tpu.core_type = #tpu.core_type<tc>} {
    %c0 = arith.constant 0 : index
    %c0_0 = arith.constant 0 : index
    %0 = vector.load %arg0[%c0, %c0_0] : memref<8x256xf32, #tpu.memory_space<vmem>>, vector<8x256xf32>
    %c1_i32 = arith.constant 1 : i32
    %1 = tpu.dynamic_rotate %0 by %c1_i32 dim 1 : vector<8x256xf32>, i32 -> vector<8x256xf32>
    %c0_1 = arith.constant 0 : index
    %c0_2 = arith.constant 0 : index
    %2 = vector.load %arg1[%c0_1, %c0_2] : memref<8x256xf32, #tpu.memory_space<vmem>>, vector<8x256xf32>
    tpu.vector_store %arg1[%c0_1, %c0_2], %1 {strides = array<i32>} : memref<8x256xf32, #tpu.memory_space<vmem>>, vector<8x256xf32>,
    return
  }
}

</mosaic_0001>

<bundles_post_ra>
// kernel: tpu_custom_call.1
= control target key start
LH: loop header
LB: loop body
LE: loop exit
PB: predicated region body
PF: predicated region fallthrough
CT: control target
= control target key end

     0   :  { %6 = vsyncpa [#allocation3], 0  ;;  %s137_s0 = inlined_call_operand.hbm [shape: f32[8,256], index: 0, kind: input, shape index: {}]   ;;  %s138_s1 = inlined_call_operand.hbm [shape: f32[8,256], index: 1, kind: output, shape index: {}]  }
   0x1   :  { %7 = vsyncpa [#allocation4], 0  ;;  %s100_s6 = smov [#allocation2]   ;;  %s52_s10 = scalar_lea.hbm %s137_s0, 256 }
   0x2   :  { %s14_s7 = sshll.u32 %s100_s6, 4  ;;  %p53_p0 = scmp.ne.s32.totalorder %s137_s0, %s52_s10  ;;  %s15_s7 = int_to_ptr.vmem [resolvable:$true] %s14_s7 }
   0x3   :  { %p56_p1 = scmp.lt.u32.totalorder %s52_s10, %s137_s0 }
   0x5   :  { %p58_p2 = pnand %p56_p1, %p53_p0 }
   0x7   :  { %61 = shalt.err (!%p58_p2)
}
   0x8   :  { %s62_s15 = scalar_lea.vmem %s15_s7, 256  ;;  %p67_p4 = scmp.lt.s32.totalorder %s15_s7, %s15_s7 }
   0x9   :  { %p63_p3 = scmp.ne.s32.totalorder %s15_s7, %s62_s15  ;;  %p68_p5 = scmp.lt.s32.totalorder %s62_s15, %s62_s15 }
   0xb   :  { %p69_p6 = por %p68_p5, %p67_p4 }
   0xd   :  { %p70_p7 = pnand %p69_p6, %p63_p3 }
   0xf   :  { %73 = shalt.err (!%p70_p7)
}
  0x10   :  { %17 = dma.hbm_to_vmem [thread:$0]  %s137_s0, 256, %s15_s7, [#allocation3]  }
  0x11   :  { %96 = dma.done.wait [#allocation3], 256  }
  0x12   :  { %97 = vsyncadd [#allocation3], 4294967040  ;;  %v21_v0 = vld [vmem:[#allocation2] sm:$0xff]  ;;  %s101_s18 = smov 1   ;;  %v22_v1 = vld [vmem:[#allocation2 + $0x8] sm:$0xff]  ;;  %v27_v2 = vlaneseq  ;;  %s102_s19 = smov [#allocation5]  }
  0x13   :  { %23 = vrot.lane.b32.xlu0 %v21_v0, %s101_s18  ;;  %s40_s20 = sshll.u32 %s102_s19, 4  ;;  %s41_s20 = int_to_ptr.vmem [resolvable:$true] %s40_s20 }
  0x14   :  { %v28_v3 = vand.u32 127, %v27_v2  ;;  %s74_s0 = scalar_lea.vmem %s41_s20, 256  ;;  %p79_p9 = scmp.lt.s32.totalorder %s41_s20, %s41_s20 }
  0x15   :  { %p75_p8 = scmp.ne.s32.totalorder %s41_s20, %s74_s0  ;;  %p80_p10 = scmp.lt.s32.totalorder %s74_s0, %s74_s0 }
  0x16   :  { %vm29_vm0 = vcmp.lt.s32.totalorder %v28_v3, 1 }
  0x17   :  { %25 = vrot.lane.b32.xlu0 %v22_v1, %s101_s18  ;;  %p81_p11 = por %p80_p10, %p79_p9 }
  0x19   :  { %p82_p12 = pnand %p81_p11, %p75_p8 }
  0x85   :  { %v24_v4 = vpop.permute.xlu0 %23 }
  0x89   :  { %v26_v5 = vpop.permute.xlu0 %25 }
  0x8a   :  { %v30_v6 = vsel %vm29_vm0, %v24_v4, %v26_v5  ;;  %v31_v7 = vsel %vm29_vm0, %v26_v5, %v24_v4 }
  0x8b   :  { %32 = vst [vmem:[#allocation5] sm:$0xff] %v31_v7  ;;  %33 = vst [vmem:[#allocation5 + $0x8] sm:$0xff] %v30_v6 }
  0x8c   :  { %85 = shalt.err (!%p82_p12)
}
  0x8d   :  { %s86_s23 = scalar_lea.hbm %s138_s1, 256 }
  0x8e   :  { %p87_p13 = scmp.ne.s32.totalorder %s138_s1, %s86_s23  ;;  %p90_p0 = scmp.lt.u32.totalorder %s86_s23, %s138_s1 }
  0x90   :  { %p92_p1 = pnand %p90_p0, %p87_p13 }
  0x92   :  { %95 = shalt.err (!%p92_p1)
}
  0x93   :  { %43 = dma.vmem_to_hbm [thread:$0]  %s41_s20, 256, %s138_s1, [#allocation4]  }
  0x94   :  { %98 = dma.done.wait [#allocation4], 256  }
  0x95   :  { %99 = vsyncadd [#allocation4], 4294967040 }
  0x96   :  { %47 = vsyncpa [#allocation3], 1 }
  0x97   :  { %48 = vsyncpa [#allocation4], 1 }

</bundles_post_ra>
